<compile_context>
chip_gen: v5e
topology: v5e:2x2
jax: 0.10.0
libtpu: 0.0.40
codegen_flags: <defaults>
</compile_context>

<pallas_src>
import jax
import jax.numpy as jnp
from jax.experimental import pallas as pl
from jax.experimental.pallas import tpu as pltpu

_LANE = 128                      # lane width of each block (last dim)
_MAX_ROWS = 4096                 # 4 MiB in + 8 MiB out (f32) per step,
                                 # ~24 MiB double-buffered -> fits all gens
_VMEM_LIMIT = 40 * 1024 * 1024   # headroom above the ~24 MiB working set,
                                 # still well under v7x's 64 MiB physical VMEM


def _wrap_encoder_kernel(x_ref, o_ref):
    # x_ref: (1, 2, tR, LANE) input dtype; o_ref: (1, 4, tR, LANE) float32.
    scale = jnp.float32(jnp.pi / 180.0)
    lon = x_ref[:, 0:1, :, :].astype(jnp.float32) * scale   # channel 0 (deg->rad)
    lat = x_ref[:, 1:2, :, :].astype(jnp.float32) * scale   # channel 1 (deg->rad)
    lon_cos = jnp.cos(lon)
    lat_sin = jnp.sin(lat)
    # PyTorch order: [cos(c0), sin(c1), cos(c0), sin(c1)] along channel dim.
    o_ref[:, 0:1, :, :] = lon_cos
    o_ref[:, 1:2, :, :] = lat_sin
    o_ref[:, 2:3, :, :] = lon_cos
    o_ref[:, 3:4, :, :] = lat_sin


def _round_up(x, m):
    return ((x + m - 1) // m) * m


def wrap_encoder(x):
    """x: (B, 2, H, W) degrees (any float dtype). Returns (B, 4, H, W) float32."""
    B, C, H, W = x.shape
    assert C == 2, "wrap_encoder expects 2 input channels (lon, lat)"
    S = H * W

    # Spatial layout: rows of width _LANE carry the (sublane, lane) axes.
    rows = pl.cdiv(S, _LANE)
    S128 = rows * _LANE           # lane-aligned spatial extent (pad < 128 elems)

    # Sublane multiple depends on input dtype packing (8 f32 / 16 bf16 / 32 fp8).
    itemsize = jnp.dtype(x.dtype).itemsize
    sub_mult = 8 * max(1, 4 // max(1, itemsize))

    # Tile rows: keep >= 2 row tiles per batch element and >= 4 grid steps total
    # (megacore balance on v7x + pipeline overlap everywhere), capped for VMEM.
    parallel_split = max(4 // B, 2)
    tR = min(_MAX_ROWS, _round_up(pl.cdiv(rows, parallel_split), sub_mult))
    tR = max(tR, sub_mult)
    num_row_tiles = pl.cdiv(rows, tR)   # last tile may be partial (Pallas-masked)

    # Flatten spatial; pad only up to the lane boundary (no-op when S % 128 == 0).
    x_flat = x.reshape(B, C, S)
    if S128 != S:
        x_flat = jnp.pad(x_flat, ((0, 0), (0, 0), (0, S128 - S)))
    x_tiled = x_flat.reshape(B, C, rows, _LANE)

    out_tiled = pl.pallas_call(
        _wrap_encoder_kernel,
        out_shape=jax.ShapeDtypeStruct((B, 4, rows, _LANE), jnp.float32),
        grid=(B, num_row_tiles),
        in_specs=[pl.BlockSpec((1, 2, tR, _LANE), lambda b, s: (b, 0, s, 0))],
        out_specs=pl.BlockSpec((1, 4, tR, _LANE), lambda b, s: (b, 0, s, 0)),
        compiler_params=pltpu.CompilerParams(
            dimension_semantics=("parallel", "parallel"),
            vmem_limit_bytes=_VMEM_LIMIT,
        ),
    )(x_tiled)

    out = out_tiled.reshape(B, 4, S128)
    if S128 != S:
        out = out[:, :, :S]
    return out.reshape(B, 4, H, W)


def _reference(x):
    rad = jnp.deg2rad(x.astype(jnp.float32))
    c0 = rad[:, 0:1, ...]
    c1 = rad[:, 1:2, ...]
    return jnp.concatenate(
        [jnp.cos(c0), jnp.sin(c1), jnp.cos(c0), jnp.sin(c1)], axis=1
    ).astype(jnp.float32)


if __name__ == "__main__":
    key = jax.random.PRNGKey(0)

    # Primary test: lane-aligned spatial extent (no pad, no slice).
    B, C, H, W = 2, 2, 16, 16
    x = jax.random.uniform(key, (B, C, H, W), jnp.float32,
                           minval=-180.0, maxval=180.0)
    out = jax.block_until_ready(wrap_encoder(x))
    ref = _reference(x)
    assert out.shape == (B, 4, H, W)
    assert out.dtype == jnp.float32
    assert jnp.allclose(out, ref, atol=1e-5, rtol=1e-5)

    # Secondary test: ragged spatial extent exercises the masked last tile +
    # minimal lane pad path.
    key2 = jax.random.PRNGKey(1)
    x2 = jax.random.uniform(key2, (1, 2, 9, 11), jnp.float32,
                            minval=-180.0, maxval=180.0)
    out2 = jax.block_until_ready(wrap_encoder(x2))
    assert jnp.allclose(out2, _reference(x2), atol=1e-5, rtol=1e-5)

    print("KERNEL_OK")
</pallas_src>

<mosaic_0001>
module attributes {stable_mosaic.version = 11 : i64} {
  func.func @_wrap_encoder_kernel(%arg0: i32, %arg1: i32, %arg2: memref<1x2x8x128xf32, #tpu.memory_space<vmem>>, %arg3: memref<1x4x8x128xf32, #tpu.memory_space<vmem>>) attributes {dimension_semantics = [#tpu.dimension_semantics<parallel>, #tpu.dimension_semantics<parallel>], iteration_bounds = array<i64: 2, 1>, scalar_prefetch = 0 : i64, scratch_operands = 0 : i64, tpu.core_type = #tpu.core_type<tc>, window_params = [{transform_indices = @transform_0, window_bounds = array<i64: 1, 2, 8, 128>}, {transform_indices = @transform_1, window_bounds = array<i64: 1, 4, 8, 128>}]} {
    %c0 = arith.constant 0 : index
    %c0_0 = arith.constant 0 : index
    %c0_1 = arith.constant 0 : index
    %c0_2 = arith.constant 0 : index
    %0 = vector.load %arg2[%c0, %c0_0, %c0_1, %c0_2] : memref<1x2x8x128xf32, #tpu.memory_space<vmem>>, vector<1x1x8x128xf32>
    %cst = arith.constant 0.0174532924 : f32
    %1 = vector.broadcast %cst : f32 to vector<1x1x8x128xf32>
    %2 = arith.mulf %0, %1 : vector<1x1x8x128xf32>
    %c0_3 = arith.constant 0 : index
    %c1 = arith.constant 1 : index
    %c0_4 = arith.constant 0 : index
    %c0_5 = arith.constant 0 : index
    %3 = vector.load %arg2[%c0_3, %c1, %c0_4, %c0_5] : memref<1x2x8x128xf32, #tpu.memory_space<vmem>>, vector<1x1x8x128xf32>
    %cst_6 = arith.constant 0.0174532924 : f32
    %4 = vector.broadcast %cst_6 : f32 to vector<1x1x8x128xf32>
    %5 = arith.mulf %3, %4 : vector<1x1x8x128xf32>
    %6 = math.cos %2 : vector<1x1x8x128xf32>
    %7 = math.sin %5 : vector<1x1x8x128xf32>
    %c0_7 = arith.constant 0 : index
    %c0_8 = arith.constant 0 : index
    %c0_9 = arith.constant 0 : index
    %c0_10 = arith.constant 0 : index
    %8 = vector.load %arg3[%c0_7, %c0_8, %c0_9, %c0_10] : memref<1x4x8x128xf32, #tpu.memory_space<vmem>>, vector<1x1x8x128xf32>
    tpu.vector_store %arg3[%c0_7, %c0_8, %c0_9, %c0_10], %6 {strides = array<i32>} : memref<1x4x8x128xf32, #tpu.memory_space<vmem>>, vector<1x1x8x128xf32>,
    %c0_11 = arith.constant 0 : index
    %c1_12 = arith.constant 1 : index
    %c0_13 = arith.constant 0 : index
    %c0_14 = arith.constant 0 : index
    %9 = vector.load %arg3[%c0_11, %c1_12, %c0_13, %c0_14] : memref<1x4x8x128xf32, #tpu.memory_space<vmem>>, vector<1x1x8x128xf32>
    tpu.vector_store %arg3[%c0_11, %c1_12, %c0_13, %c0_14], %7 {strides = array<i32>} : memref<1x4x8x128xf32, #tpu.memory_space<vmem>>, vector<1x1x8x128xf32>,
    %c0_15 = arith.constant 0 : index
    %c2 = arith.constant 2 : index
    %c0_16 = arith.constant 0 : index
    %c0_17 = arith.constant 0 : index
    %10 = vector.load %arg3[%c0_15, %c2, %c0_16, %c0_17] : memref<1x4x8x128xf32, #tpu.memory_space<vmem>>, vector<1x1x8x128xf32>
    tpu.vector_store %arg3[%c0_15, %c2, %c0_16, %c0_17], %6 {strides = array<i32>} : memref<1x4x8x128xf32, #tpu.memory_space<vmem>>, vector<1x1x8x128xf32>,
    %c0_18 = arith.constant 0 : index
    %c3 = arith.constant 3 : index
    %c0_19 = arith.constant 0 : index
    %c0_20 = arith.constant 0 : index
    %11 = vector.load %arg3[%c0_18, %c3, %c0_19, %c0_20] : memref<1x4x8x128xf32, #tpu.memory_space<vmem>>, vector<1x1x8x128xf32>
    tpu.vector_store %arg3[%c0_18, %c3, %c0_19, %c0_20], %7 {strides = array<i32>} : memref<1x4x8x128xf32, #tpu.memory_space<vmem>>, vector<1x1x8x128xf32>,
    return
  }
  func.func @transform_0(%arg0: i32, %arg1: i32) -> (i32, i32, i32, i32) {
    %c0_i32 = arith.constant 0 : i32
    %c0_i32_0 = arith.constant 0 : i32
    %c0_i32_1 = arith.constant 0 : i32
    return %arg0, %c0_i32, %arg1, %c0_i32_0 : i32, i32, i32, i32
  }
  func.func @transform_1(%arg0: i32, %arg1: i32) -> (i32, i32, i32, i32) {
    %c0_i32 = arith.constant 0 : i32
    %c0_i32_0 = arith.constant 0 : i32
    %c0_i32_1 = arith.constant 0 : i32
    return %arg0, %c0_i32, %arg1, %c0_i32_0 : i32, i32, i32, i32
  }
}

</mosaic_0001>

<bundles_post_ra>
// kernel: tpu_custom_call.1
= control target key start
LH: loop header
LB: loop body
LE: loop exit
PB: predicated region body
PF: predicated region fallthrough
CT: control target
= control target key end

     0   :  { %6 = vsyncpa [#allocation3], 0  ;;  %s1125_s0 = inlined_call_operand.hbm [shape: f32[2,2,2,128], index: 0, kind: input, shape index: {}]   ;;  %s1126_s1 = inlined_call_operand.hbm [shape: f32[2,4,2,128], index: 1, kind: output, shape index: {}]  }
   0x1   :  { %8 = vsyncpa [#allocation3 + $0x1], 0 }
   0x2   :  { %9 = vsyncpa [#allocation4], 0 }
   0x3   :  { %11 = vsyncpa [#allocation4 + $0x1], 0  ;;  %s833_s6 = smov 0   ;;  %s835_s7 = smov 0  }
   0x4   :  { %s837_s8 = smov 0   ;;  %s839_s9 = smov 0  }
   0x5   :  { %s841_s10 = smov 0   ;;  %s843_s11 = smov 0  }
   0x6 LB: > { %s647_s12 = sadd.s32 4294967295, %s803_s11   ;;  %s648_s13 = sadd.s32 4294967294, %s803_s11   ;;  %s803_s11 = sphi %s843_s11, %s17_s11   ;;  %s799_s10 = sphi %s841_s10, %s1138_s10   ;;  %s795_s9 = sphi %s839_s9, %s1137_s9   ;;  %s791_s8 = sphi %s837_s8, %s1136_s8   ;;  %s787_s7 = sphi %s835_s7, %s1135_s7   ;;  %s783_s6 = sphi %s833_s6, %s1134_s6  }
   0x7   : > { %s29_s14 = sadd.s32 1, %s799_s10  ;;  %s38_s15 = sadd.s32 1, %s791_s8 }
   0x8   : > { %p31_p0 = scmp.ge.s32.totalorder %s29_s14, 2  ;;  %p45_p1 = scmp.ne.s32.totalorder %s791_s8, %s787_s7 }
   0x9   : > { %p46_p2 = scmp.eq.s32.totalorder %s803_s11, 0  ;;  %p51_p3 = scmp.ne.s32.totalorder %s787_s7, %s783_s6 }
   0xa   : > { %s1140_s14 = smov (%p31_p0, %s29_s14), 0  ;;  %p52_p5 = scmp.eq.s32.totalorder %s647_s12, 0 }
   0xb   : > { %p47_p4 = por %p46_p2, %p45_p1  ;;  %s33_s16 = ssub.s32 %s799_s10, %s1140_s14 }
   0xc   : > { %p77_p6 = scmp.eq.s32.totalorder %s647_s12, 1  ;;  %p36_p7 = scmp.eq.s32.totalorder %s33_s16, 0 }
   0xd   : > { %p876_p8 = por %p52_p5, %p51_p3  ;;  %p83_p10 = scmp.eq.s32.totalorder %s648_s13, 1 }
   0xe   : > { %p880_p9 = por %p77_p6, %p45_p1  ;;  %p650_p12 = scmp.ge.s32.totalorder %s803_s11, 2 }
   0xf   : > { %s885_s19 = scalar_select %p36_p7, %s791_s8, %s38_s15  }
  0x10   : > { %p887_p11 = por %p83_p10, %p51_p3  ;;  %99 = sbr.rel (%p650_p12) target bundleno = 39 (0x27), region = 16 }
  0x15   : > { %102 = sbr.rel (!%p47_p4) target bundleno = 39 (0x27), region = 20 }
  0x1a   : > { %s103_s21 = sand.u32 1, %s791_s8  }
  0x1b   : > { %s651_s22 = sshll.u32 %s103_s21, 4  ;;  %s104_s23 = scalar_lea.sflag [#allocation3], %s103_s21 }
  0x1c   : > { %s107_s24 = scalar_lea.vmem [#allocation2], %s651_s22 }
  0x1d   : > { %113 = vsyncadd %s104_s23, 192  ;;  %s674_s25 = sshll.u32 %s799_s10, 2  ;;  %s125_s26 = sld [smem:[#allocation0]]  }
  0x1e   : > { %s118_s29 = scalar_lea.hbm %s1125_s0, %s674_s25  ;;  %s135_s30 = sshll.u32 %s107_s24, 4  ;;  %s136_s30 = int_to_ptr.vmem [resolvable:$true] %s135_s30 }
  0x1f   : > { %s133_s2 = sshll.u32 %s118_s29, 4  ;;  %s805_s3 = smov 32   ;;  %s134_s2 = int_to_ptr.hbm [resolvable:$true] %s133_s2 }
  0x20   : > { %142 = sst [smem:[#allocation7]] %s805_s3  ;;  %s806_s4 = smov 128  }
  0x21   : > { %144 = sst [smem:[#allocation7 + $0x1]] %s806_s4  ;;  %s807_s12 = smov 1  }
  0x22   : > { %146 = sst [smem:[#allocation7 + $0x2]] %s807_s12  ;;  %s808_s15 = smov 2  }
  0x23   : > { %s654_s5 = sshll.u32 %s125_s26, 26  ;;  %148 = sst [smem:[#allocation7 + $0x3]] %s805_s3 }
  0x24   : > { %s655_s13 = sadd.s32 134217728, %s654_s5  ;;  %150 = sst [smem:[#allocation7 + $0x4]] %s805_s3 }
  0x25   : > { %152 = sst [smem:[#allocation7 + $0x5]] %s808_s15  ;;  %s809_s16 = smov [#allocation6]  }
  0x26   : > { %154 = dma.general %s134_s2, 64, %s136_s30, %s104_s23, %s809_s16, [#allocation7], %s655_s13, 0  }
  0x27 PF: > { %p656_p13 = scmp.ge.s32.totalorder %s803_s11, 1  ;;  %p156_p0 = scmp.lt.s32.totalorder %s803_s11, 3 }
  0x29   : > { %p157_p1 = pnand %p656_p13, %p156_p0 }
  0x2a   : > { %s902_s21 = sand.u32 (!%p157_p1), 1, %s787_s7  }
  0x2b   : > { %160 = sbr.rel (%p157_p1) target bundleno = 180 (0xb4), region = 24  ;;  %s657_s22 = sshll.u32 (!%p157_p1), %s902_s21, 4 }
  0x2c   : > { %s163_s24 = scalar_lea.sflag (!%p157_p1), [#allocation3], %s902_s21  ;;  %s166_s25 = scalar_lea.vmem (!%p157_p1), [#allocation2], %s657_s22 }
  0x30   : > { %774 = dma.done.wait (%p876_p8), %s163_s24, 256  }
  0x31   : > { %776 = vsyncadd (%p876_p8), %s163_s24, 4294967040  ;;  %v192_v0 = vld [vmem:[%s166_s25] sm:$0xff]  ;;  %v659_v1 = vld [vmem:[%s166_s25 + $0x8] sm:$0xff]  ;;  %v810_v25 = vmov 683565275   ;;  %s658_s17 = sshll.u32 %s902_s21, 5 }
  0x32   : > { %v910_v2 = vmul.f32 0.017453292, %v192_v0  ;;  %v912_v3 = vmul.f32 0.017453292, %v659_v1  ;;  %v811_v27 = vmov 2475754826  }
  0x33   : > { %v812_v29 = vmov 2131351028   ;;  %v813_v31 = vmov 2102212464   ;;  %v814_v33 = vmov 920167782  }
  0x34   : > { %v197_v4 = vand.u32 2147483647, %v910_v2  ;;  %v200_v5 = vand.u32 2139095040, %v910_v2  ;;  %v351_v6 = vand.u32 2147483647, %v912_v3  ;;  %v354_v7 = vand.u32 2139095040, %v912_v3 }
  0x35   : > { %v815_v42 = vmov 1326507024   ;;  %s1085_s23 = scalar_lea.vmem [#allocation5], %s658_s17  ;;  %s514_s26 = scalar_lea.sflag [#allocation4], %s902_s21 }
  0x36   : > { %v201_v8 = vshrl.u32 %v200_v5, 23  ;;  %v204_v9 = vand.u32 8388607, %v197_v4  ;;  %v355_v10 = vshrl.u32 %v354_v7, 23  ;;  %v358_v14 = vand.u32 8388607, %v351_v6 }
  0x38   : > { %v660_v11 = vadd.s32 4294967169, %v201_v8  ;;  %v205_v12 = vor.u32 8388608, %v204_v9  ;;  %v663_v13 = vadd.s32 4294967169, %v355_v10  ;;  %v359_v19 = vor.u32 8388608, %v358_v14 }
  0x3a   : > { %v207_v15 = vadd.s32 1, %v660_v11  ;;  %v361_v16 = vadd.s32 1, %v663_v13  ;;  %v922_v18 = vshll.u32 %v205_v12, 8  ;;  %v932_v36 = vshll.u32 %v359_v19, 8 }
  0x3c   : > { %vm208_vm0 = vcmp.gt.s32.totalorder %v207_v15, 0  ;;  %vm362_vm1 = vcmp.gt.s32.totalorder %v361_v16, 0  ;;  %v246_v35 = vand.u32 65535, %v922_v18  ;;  %v247_v40 = vshrl.u32 %v922_v18, 16 }
  0x3d   : > { %v209_v17 = vsel %vm208_vm0, %v207_v15, 0  ;;  %v363_v21 = vsel %vm362_vm1, %v361_v16, 0 }
  0x3e   : > { %v211_v20 = vand.u32 31, %v209_v17  ;;  %v924_v22 = vshrl.u32 %v209_v17, 5  ;;  %v926_v23 = vand.u32 31, %v363_v21  ;;  %v950_v53 = vshrl.u32 %v363_v21, 5 }
  0x40   : > { %v212_v24 = vsub.s32 32, %v211_v20  ;;  %v214_v26 = vshll.u32 %v810_v25, %v211_v20  ;;  %v217_v28 = vshll.u32 %v811_v27, %v211_v20  ;;  %v220_v30 = vshll.u32 %v812_v29, %v211_v20 }
  0x41   : > { %v223_v32 = vshll.u32 %v813_v31, %v211_v20  ;;  %v226_v34 = vshll.u32 %v814_v33, %v211_v20  ;;  %vm229_vm2 = vcmp.lt.s32.totalorder %v924_v22, 1  ;;  %vm232_vm3 = vcmp.lt.s32.totalorder %v924_v22, 4 }
  0x42   : > { %v215_v37 = vshrl.u32 %v811_v27, %v212_v24  ;;  %v218_v38 = vshrl.u32 %v812_v29, %v212_v24  ;;  %v221_v39 = vshrl.u32 %v813_v31, %v212_v24  ;;  %v224_v41 = vshrl.u32 %v814_v33, %v212_v24 }
  0x43   : > { %v227_v43 = vshrl.u32 %v815_v42, %v212_v24  ;;  %v941_v47 = vsub.s32 32, %v926_v23  ;;  %v213_v48 = vshrl.u32 %v810_v25, %v212_v24  ;;  %vm231_vm4 = vcmp.lt.s32.totalorder %v924_v22, 3 }
  0x44   : > { %v216_v44 = vor.u32 %v215_v37, %v214_v26  ;;  %v219_v45 = vor.u32 %v218_v38, %v217_v28  ;;  %v222_v46 = vor.u32 %v221_v39, %v220_v30  ;;  %v225_v49 = vor.u32 %v224_v41, %v223_v32 }
  0x45   : > { %v228_v50 = vor.u32 %v227_v43, %v226_v34  ;;  %vm230_vm5 = vcmp.lt.s32.totalorder %v924_v22, 2  ;;  %v368_v56 = vshll.u32 %v810_v25, %v926_v23  ;;  %v371_v57 = vshll.u32 %v811_v27, %v926_v23 }
  0x46   : > { %v237_v51 = vsel %vm229_vm2, %v216_v44, %v219_v45  ;;  %v241_v52 = vsel %vm229_vm2, %v219_v45, %v222_v46  ;;  %v238_v54 = vsel %vm232_vm3, %v225_v49, 920167782  ;;  %v234_v58 = vsel %vm232_vm3, %v222_v46, 2102212464 }
  0x47   : > { %v242_v55 = vsel %vm232_vm3, %v228_v50, 1326507024  ;;  %v239_v59 = vsel %vm231_vm4, %v222_v46, %v238_v54  ;;  %v369_v61 = vshrl.u32 %v811_v27, %v941_v47  ;;  %v233_v62 = vsel %vm229_vm2, %v213_v48, %v216_v44 }
  0x48   : > { %v243_v60 = vsel %vm231_vm4, %v225_v49, %v242_v55  ;;  %v240_v63 = vsel %vm230_vm5, %v237_v51, %v239_v59  ;;  %v372_v1 = vshrl.u32 %v812_v29, %v941_v47  ;;  %v235_v10 = vsel %vm231_vm4, %v219_v45, %v234_v58 }
  0x49   : > { %v244_v0 = vsel %vm230_vm5, %v241_v52, %v243_v60  ;;  %v270_v8 = vand.u32 65535, %v240_v63  ;;  %v271_v9 = vshrl.u32 %v240_v63, 16  ;;  %v975_v11 = vor.u32 %v369_v61, %v368_v56 }
  0x4a   : > { %v248_v5 = vand.u32 65535, %v244_v0  ;;  %v249_v7 = vshrl.u32 %v244_v0, 16  ;;  %v977_v12 = vor.u32 %v372_v1, %v371_v57  ;;  %v374_v13 = vshll.u32 %v812_v29, %v926_v23 }
  0x4b   : > { %v375_v17 = vshrl.u32 %v813_v31, %v941_v47  ;;  %v272_v20 = vmul.u32 %v270_v8, %v246_v35  ;;  %v273_v21 = vmul.u32 %v271_v9, %v246_v35  ;;  %v274_v24 = vmul.u32 %v270_v8, %v247_v40 }
  0x4c   : > { %v250_v14 = vmul.u32 %v248_v5, %v246_v35  ;;  %v251_v15 = vmul.u32 %v249_v7, %v246_v35  ;;  %v252_v16 = vmul.u32 %v248_v5, %v247_v40  ;;  %v253_v19 = vmul.u32 %v249_v7, %v247_v40 }
  0x4d   : > { %v275_v30 = vmul.u32 %v271_v9, %v247_v40  ;;  %v276_v34 = vshll.u32 %v273_v21, 16  ;;  %v277_v37 = vshrl.u32 %v273_v21, 16  ;;  %v278_v38 = vshll.u32 %v274_v24, 16 }
  0x4e   : > { %v254_v26 = vshll.u32 %v251_v15, 16  ;;  %v255_v27 = vshrl.u32 %v251_v15, 16  ;;  %v256_v28 = vshll.u32 %v252_v16, 16  ;;  %v257_v32 = vshrl.u32 %v252_v16, 16 }
  0x4f   : > { %v279_v39 = vshrl.u32 %v274_v24, 16  ;;  %v377_v41 = vshll.u32 %v813_v31, %v926_v23  ;;  %v816_v43 = vmov 0   ;;  %vm280_vm7 = vc.u32 %v272_v20, %v276_v34 }
  0x50   : > { %vm258_vm6 = vc.u32 %v250_v14, %v254_v26  ;;  %v260_v29 = vadd.s32 %v254_v26, %v250_v14  ;;  %v282_v35 = vadd.s32 %v276_v34, %v272_v20  ;;  %v378_v45 = vshrl.u32 %v814_v33, %v941_v47 }
  0x51   : > { %v259_v44 = vsel %vm258_vm6, 1, %v816_v43  ;;  %v281_v40 = vsel %vm280_vm7, 1, %v816_v43  ;;  %v380_v48 = vshll.u32 %v814_v33, %v926_v23  ;;  %v376_v31 = vor.u32 %v375_v17, %v374_v13 }
  0x52   : > { %v261_v46 = vadd.s32 %v259_v44, %v253_v19  ;;  %vm262_vm8 = vc.u32 %v260_v29, %v256_v28  ;;  %v283_v50 = vadd.s32 %v281_v40, %v275_v30  ;;  %vm284_vm9 = vc.u32 %v282_v35, %v278_v38 }
  0x53   : > { %v263_v49 = vsel %vm262_vm8, 1, %v816_v43  ;;  %v285_v52 = vsel %vm284_vm9, 1, %v816_v43  ;;  %v379_v54 = vor.u32 %v378_v45, %v377_v41  ;;  %v381_v55 = vshrl.u32 %v815_v42, %v941_v47 }
  0x54   : > { %v265_v51 = vadd.s32 %v263_v49, %v261_v46  ;;  %v994_v56 = vadd.s32 %v282_v35, %v278_v38  ;;  %v287_v57 = vadd.s32 %v285_v52, %v283_v50  ;;  %vm383_vm10 = vcmp.lt.s32.totalorder %v950_v53, 1 }
  0x55   : > { %vm385_vm11 = vcmp.lt.s32.totalorder %v950_v53, 3  ;;  %v382_v33 = vor.u32 %v381_v55, %v380_v48  ;;  %vm384_vm12 = vcmp.lt.s32.totalorder %v950_v53, 2  ;;  %vm386_vm13 = vcmp.lt.s32.totalorder %v950_v53, 4 }
  0x56   : > { %v266_v23 = vadd.s32 %v265_v51, %v255_v27  ;;  %v236_v58 = vsel %vm230_vm5, %v233_v62, %v235_v10  ;;  %v288_v59 = vadd.s32 %v287_v57, %v277_v37  ;;  %v391_v42 = vsel %vm383_vm10, %v975_v11, %v977_v12 }
  0x57   : > { %v392_v60 = vsel %vm386_vm13, %v379_v54, 920167782  ;;  %v395_v0 = vsel %vm383_vm10, %v977_v12, %v376_v31  ;;  %v400_v22 = vand.u32 65535, %v932_v36  ;;  %v396_v5 = vsel %vm386_vm13, %v382_v33, 1326507024 }
  0x58   : > { %v1008_v61 = vadd.s32 %v266_v23, %v257_v32  ;;  %v393_v63 = vsel %vm385_vm11, %v376_v31, %v392_v60  ;;  %v289_v62 = vadd.s32 %v288_v59, %v279_v39  ;;  %v401_v7 = vshrl.u32 %v932_v36, 16 }
  0x59   : > { %v394_v1 = vsel %vm384_vm12, %v391_v42, %v393_v63  ;;  %v290_v8 = vmul.u32 %v922_v18, %v236_v58  ;;  %v397_v9 = vsel %vm385_vm11, %v379_v54, %v396_v5  ;;  %v367_v16 = vshrl.u32 %v810_v25, %v941_v47 }
  0x5a   : > { %vm292_vm14 = vc.u32 %v1008_v61, %v994_v56  ;;  %v424_v10 = vand.u32 65535, %v394_v1  ;;  %v293_v13 = vadd.s32 1, %v289_v62  ;;  %v398_v14 = vsel %vm384_vm12, %v395_v0, %v397_v9 }
  0x5b   : > { %v425_v15 = vshrl.u32 %v394_v1, 16  ;;  %v402_v17 = vand.u32 65535, %v398_v14  ;;  %v403_v19 = vshrl.u32 %v398_v14, 16  ;;  %v388_v37 = vsel %vm386_vm13, %v376_v31, 2102212464 }
  0x5c   : > { %v294_v20 = vsel %vm292_vm14, %v293_v13, %v289_v62  ;;  %v426_v21 = vmul.u32 %v424_v10, %v400_v22  ;;  %v428_v24 = vmul.u32 %v424_v10, %v401_v7  ;;  %v387_v25 = vsel %vm383_vm10, %v367_v16, %v975_v11 }
  0x5d   : > { %v427_v18 = vmul.u32 %v425_v15, %v400_v22  ;;  %v295_v26 = vadd.s32 %v294_v20, %v290_v8  ;;  %v404_v27 = vmul.u32 %v402_v17, %v400_v22  ;;  %v405_v28 = vmul.u32 %v403_v19, %v400_v22 }
  0x5e   : > { %v406_v30 = vmul.u32 %v402_v17, %v401_v7  ;;  %v407_v38 = vmul.u32 %v403_v19, %v401_v7  ;;  %v429_v39 = vmul.u32 %v425_v15, %v401_v7  ;;  %v432_v41 = vshll.u32 %v428_v24, 16 }
  0x5f   : > { %v430_v32 = vshll.u32 %v427_v18, 16  ;;  %v296_v34 = vadd.s32 536870912, %v295_v26  ;;  %v408_v29 = vshll.u32 %v405_v28, 16  ;;  %v389_v45 = vsel %vm385_vm11, %v977_v12, %v388_v37 }
  0x60   : > { %v410_v47 = vshll.u32 %v406_v30, 16  ;;  %v409_v11 = vshrl.u32 %v405_v28, 16  ;;  %v431_v51 = vshrl.u32 %v427_v18, 16  ;;  %v411_v55 = vshrl.u32 %v406_v30, 16 }
  0x61   : > { %v1035_v44 = vshrl.u32 %v296_v34, 30  ;;  %vm412_vm15 = vc.u32 %v404_v27, %v408_v29  ;;  %v414_v35 = vadd.s32 %v408_v29, %v404_v27  ;;  %vm434_vm0 = vc.u32 %v426_v21, %v430_v32 }
  0x62   : > { %v413_v46 = vsel %vm412_vm15, 1, %v816_v43  ;;  %v435_v40 = vsel %vm434_vm0, 1, %v816_v43  ;;  %v436_v48 = vadd.s32 %v430_v32, %v426_v21  ;;  %v433_v23 = vshrl.u32 %v428_v24, 16 }
  0x63   : > { %v298_v49 = vshll.u32 %v1035_v44, 30  ;;  %v415_v50 = vadd.s32 %v413_v46, %v407_v38  ;;  %vm416_vm1 = vc.u32 %v414_v35, %v410_v47  ;;  %v437_v52 = vadd.s32 %v435_v40, %v429_v39 }
  0x64   : > { %v417_v31 = vsel %vm416_vm1, 1, %v816_v43  ;;  %vm438_vm2 = vc.u32 %v436_v48, %v432_v41  ;;  %v440_v42 = vadd.s32 %v436_v48, %v432_v41  ;;  %v390_v60 = vsel %vm384_vm12, %v387_v25, %v389_v45 }
  0x65   : > { %v299_v54 = vsub.s32 %v295_v26, %v298_v49  ;;  %v419_v57 = vadd.s32 %v417_v31, %v415_v50  ;;  %v439_v12 = vsel %vm438_vm2, 1, %v816_v43  ;;  %v444_v5 = vmul.u32 %v932_v36, %v390_v60 }
  0x66   : > { %v441_v33 = vadd.s32 %v439_v12, %v437_v52  ;;  %v291_v43 = vadd.s32 %v994_v56, %v1008_v61  ;;  %vm199_vm7 = vcmp.lt.s32.totalorder %v910_v2, 0  ;;  %vm1056_vm8 = vcmp.le.f32.partialorder %v197_v4, 0.7853982 }
  0x67   : > { %vm300_vm3 = vcmp.lt.s32.totalorder %v299_v54, 0  ;;  %v301_v58 = vsub.s32 0, %v299_v54  ;;  %v420_v59 = vadd.s32 %v419_v57, %v409_v11  ;;  %v321_v25 = vsub.s32 4, %v1035_v44 }
  0x68   : > { %v442_v63 = vadd.s32 %v441_v33, %v431_v51  ;;  %vm353_vm11 = vcmp.lt.s32.totalorder %v912_v3, 0  ;;  %vm1076_vm13 = vcmp.le.f32.partialorder %v351_v6, 0.7853982  ;;  %vm340_vm15 = vweird.f32 %v910_v2 }
  0x69   : > { %v302_v0 = vsel %vm300_vm3, %v301_v58, %v299_v54  ;;  %v421_v22 = vadd.s32 %v420_v59, %v411_v55  ;;  %v322_v48 = vsel %vm199_vm7, %v321_v25, %v1035_v44  ;;  %vm494_vm3 = vweird.f32 %v912_v3 }
  0x6a   : > { %v303_v62 = vclz %v302_v0  ;;  %v443_v1 = vadd.s32 %v442_v63, %v433_v23  ;;  %v324_v52 = vsel %vm1056_vm8, 0, %v322_v48 }
  0x6b   : > { %vm446_vm4 = vc.u32 %v421_v22, %v440_v42  ;;  %v445_v41 = vadd.s32 %v440_v42, %v421_v22  ;;  %v341_v58 = vand.u32 3, %v324_v52 }
  0x6c   : > { %v661_v7 = vadd.s32 4294967294, %v303_v62  ;;  %v447_v8 = vadd.s32 1, %v443_v1 }
  0x6d   : > { %vm346_vm10 = vcmp.eq.s32.totalorder %v341_v58, 2  ;;  %vm343_vm12 = vcmp.eq.s32.totalorder %v341_v58, 0  ;;  %vm342_vm14 = vcmp.lt.s32.totalorder %v341_v58, 2 }
  0x6e   : > { %vm662_vm5 = vcmp.lt.s32.totalorder %v661_v7, 0  ;;  %v448_v9 = vsel %vm446_vm4, %v447_v8, %v443_v1 }
  0x6f   : > { %v306_v10 = vsel %vm662_vm5, 0, %v661_v7  ;;  %v449_v13 = vadd.s32 %v448_v9, %v444_v5 }
  0x70   : > { %v307_v14 = vsub.s32 32, %v306_v10  ;;  %v308_v53 = vshll.u32 %v299_v54, %v306_v10  ;;  %v311_v15 = vsub.s32 4294967266, %v306_v10 }
  0x71   : > { %v450_v16 = vadd.s32 536870912, %v449_v13 }
  0x72   : > { %v309_v17 = vshrl.u32 %v291_v43, %v307_v14  ;;  %v312_v19 = vadd.s32 127, %v311_v15 }
  0x73   : > { %v1050_v20 = vshrl.u32 %v450_v16, 30 }
  0x74   : > { %v310_v21 = vor.u32 %v309_v17, %v308_v53  ;;  %v313_v36 = vshll.u32 %v312_v19, 23 }
  0x75   : > { %v452_v18 = vshll.u32 %v1050_v20, 30  ;;  %v475_v7 = vsub.s32 4, %v1050_v20 }
  0x76   : > { %v314_v24 = vor.u32 4788187, %v313_v36  ;;  %v317_v26 = vcvt.s32.f32 %v310_v21 }
  0x77   : > { %v453_v27 = vsub.s32 %v449_v13, %v452_v18  ;;  %v476_v53 = vsel %vm353_vm11, %v475_v7, %v1050_v20 }
  0x78   : > { %v315_v56 = vand.u32 2147483647, %v314_v24  ;;  %v478_v19 = vsel %vm1076_vm13, 0, %v476_v53 }
  0x79   : > { %vm454_vm6 = vcmp.lt.s32.totalorder %v453_v27, 0  ;;  %v455_v61 = vsub.s32 0, %v453_v27  ;;  %v495_v18 = vadd.s32 3, %v478_v19 }
  0x7a   : > { %v318_v28 = vmul.f32 %v317_v26, %v315_v56 }
  0x7b   : > { %v456_v30 = vsel %vm454_vm6, %v455_v61, %v453_v27  ;;  %v496_v61 = vand.u32 3, %v495_v18 }
  0x7c   : > { %v319_v34 = vxor.u32 2147483648, %v318_v28  ;;  %v457_v37 = vclz %v456_v30 }
  0x7d   : > { %vm501_vm0 = vcmp.eq.s32.totalorder %v496_v61, 2  ;;  %vm498_vm1 = vcmp.eq.s32.totalorder %v496_v61, 0  ;;  %vm497_vm2 = vcmp.lt.s32.totalorder %v496_v61, 2 }
  0x7e   : > { %v320_v38 = vsel %vm199_vm7, %v319_v34, %v318_v28  ;;  %v664_v29 = vadd.s32 4294967294, %v457_v37 }
  0x7f   : > { %v323_v47 = vsel %vm1056_vm8, %v910_v2, %v320_v38 }
  0x80   : > { %v325_v39 = vmul.f32 %v323_v47, %v323_v47  ;;  %vm665_vm9 = vcmp.lt.s32.totalorder %v664_v29, 0 }
  0x81   : > { %v460_v35 = vsel %vm665_vm9, 0, %v664_v29 }
  0x82   : > { %v326_v4 = vmul.f32 -0.001358992, %v325_v39  ;;  %v333_v45 = vmul.f32 -0.00019511016, %v325_v39  ;;  %v461_v46 = vsub.s32 32, %v460_v35  ;;  %v462_v40 = vshll.u32 %v453_v27, %v460_v35 }
  0x83   : > { %v465_v49 = vsub.s32 4294967266, %v460_v35 }
  0x84   : > { %v327_v11 = vadd.f32 0.041655596, %v326_v4  ;;  %v334_v50 = vadd.f32 0.008332121, %v333_v45  ;;  %v463_v31 = vshrl.u32 %v445_v41, %v461_v46 }
  0x85   : > { %v466_v51 = vadd.s32 127, %v465_v49 }
  0x86   : > { %v328_v54 = vmul.f32 %v327_v11, %v325_v39  ;;  %v335_v55 = vmul.f32 %v334_v50, %v325_v39  ;;  %v464_v57 = vor.u32 %v463_v31, %v462_v40 }
  0x87   : > { %v467_v12 = vshll.u32 %v466_v51, 23 }
  0x88   : > { %v329_v23 = vadd.f32 -0.4999988, %v328_v54  ;;  %v336_v33 = vadd.f32 -0.16666654, %v335_v55  ;;  %v471_v42 = vcvt.s32.f32 %v464_v57 }
  0x89   : > { %v468_v59 = vor.u32 4788187, %v467_v12 }
  0x8a   : > { %v330_v60 = vmul.f32 %v329_v23, %v325_v39  ;;  %v337_v44 = vmul.f32 %v336_v33, %v325_v39 }
  0x8b   : > { %v469_v63 = vand.u32 2147483647, %v468_v59 }
  0x8c   : > { %v331_v0 = vadd.f32 1.0, %v330_v60  ;;  %v338_v22 = vadd.f32 1.0, %v337_v44 }
  0x8d   : > { %v472_v62 = vmul.f32 %v471_v42, %v469_v63 }
  0x8e   : > { %v339_v1 = vmul.f32 %v338_v22, %v323_v47  ;;  %v347_v5 = vxor.u32 2147483648, %v331_v0 }
  0x8f   : > { %v473_v43 = vxor.u32 2147483648, %v472_v62 }
  0x90   : > { %v344_v9 = vxor.u32 2147483648, %v339_v1  ;;  %v348_v10 = vsel %vm346_vm10, %v347_v5, %v339_v1 }
  0x91   : > { %v474_v13 = vsel %vm353_vm11, %v473_v43, %v472_v62 }
  0x92   : > { %v345_v14 = vsel %vm343_vm12, %v331_v0, %v344_v9  ;;  %v477_v15 = vsel %vm1076_vm13, %v912_v3, %v474_v13 }
  0x93   : > { %v349_v16 = vsel %vm342_vm14, %v345_v14, %v348_v10  ;;  %v479_v17 = vmul.f32 %v477_v15, %v477_v15 }
  0x94   : > { %v350_v6 = vsel %vm340_vm15, nan, %v349_v16 }
  0x95   : > { %506 = vst [vmem:[%s1085_s23] sm:$0xff] %v350_v6  ;;  %v480_v2 = vmul.f32 -0.001358992, %v479_v17  ;;  %v487_v21 = vmul.f32 -0.00019511016, %v479_v17 }
  0x96   : > { %667 = vst [vmem:[%s1085_s23 + $0x10] sm:$0xff] %v350_v6 }
  0x97   : > { %v481_v36 = vadd.f32 0.041655596, %v480_v2  ;;  %v488_v20 = vadd.f32 0.008332121, %v487_v21 }
  0x99   : > { %v482_v24 = vmul.f32 %v481_v36, %v479_v17  ;;  %v489_v26 = vmul.f32 %v488_v20, %v479_v17 }
  0x9b   : > { %v483_v27 = vadd.f32 -0.4999988, %v482_v24  ;;  %v490_v56 = vadd.f32 -0.16666654, %v489_v26 }
  0x9d   : > { %v484_v28 = vmul.f32 %v483_v27, %v479_v17  ;;  %v491_v30 = vmul.f32 %v490_v56, %v479_v17 }
  0x9f   : > { %v485_v32 = vadd.f32 1.0, %v484_v28  ;;  %v492_v34 = vadd.f32 1.0, %v491_v30 }
  0xa1   : > { %v493_v37 = vmul.f32 %v492_v34, %v477_v15  ;;  %v502_v38 = vxor.u32 2147483648, %v485_v32 }
  0xa3   : > { %v499_v29 = vxor.u32 2147483648, %v493_v37  ;;  %v503_v25 = vsel %vm501_vm0, %v502_v38, %v493_v37 }
  0xa5   : > { %v500_v47 = vsel %vm498_vm1, %v485_v32, %v499_v29  ;;  %520 = sbr.rel (!%p880_p9) target bundleno = 180 (0xb4), region = 32 }
  0xa6   : > { %v504_v39 = vsel %vm497_vm2, %v500_v47, %v503_v25 }
  0xa7   : > { %v505_v41 = vsel %vm494_vm3, nan, %v504_v39 }
  0xa8   : > { %666 = vst [vmem:[%s1085_s23 + $0x8] sm:$0xff] %v505_v41 }
  0xa9   : > { %668 = vst [vmem:[%s1085_s23 + $0x18] sm:$0xff] %v505_v41 }
  0xaa   : > { %526 = vsyncadd %s514_s26, 384  ;;  %s675_s27 = sshll.u32 %s795_s9, 3  ;;  %s544_s28 = sshll.u32 %s1085_s23, 4  ;;  %s545_s28 = int_to_ptr.vmem [resolvable:$true] %s544_s28 }
  0xab   : > { %s531_s2 = scalar_lea.hbm %s1126_s1, %s675_s27  ;;  %s817_s4 = smov 128  }
  0xac   : > { %s546_s3 = sshll.u32 %s531_s2, 4  ;;  %553 = sst [smem:[#allocation9]] %s817_s4  ;;  %s547_s3 = int_to_ptr.hbm [resolvable:$true] %s546_s3 }
  0xad   : > { %s818_s5 = smov 32   ;;  %s819_s12 = smov 1  }
  0xae   : > { %555 = sst [smem:[#allocation9 + $0x1]] %s818_s5  ;;  %s820_s18 = smov 2  }
  0xaf   : > { %557 = sst [smem:[#allocation9 + $0x2]] %s819_s12  ;;  %s821_s13 = smov [#allocation8]  }
  0xb0   : > { %559 = sst [smem:[#allocation9 + $0x3]] %s818_s5  ;;  %s822_s9 = smov 0  }
  0xb1   : > { %561 = sst [smem:[#allocation9 + $0x4]] %s818_s5 }
  0xb2   : > { %563 = sst [smem:[#allocation9 + $0x5]] %s820_s18 }
  0xb3   : > { %565 = dma.general %s545_s28, 128, %s547_s3, %s514_s26, %s821_s13, [#allocation9], %s822_s9, 0  }
  0xb4 PF: > { %s574_s15 = sand.u32 1, %s783_s6   ;;  %p679_p2 = pnand %p650_p12, %p887_p11 }
  0xb5   : > { %s575_s16 = scalar_lea.sflag [#allocation4], %s574_s15 }
  0xb6   : > { %p680_p3 = pneg %p679_p2 }
  0xb8   : > { %778 = dma.done.wait (%p680_p3), %s575_s16, 512  }
  0xb9   : > { %780 = vsyncadd (%p680_p3), %s575_s16, 4294966784  ;;  %s17_s11 = sadd.s32 1, %s803_s11   ;;  %s1134_s6 = smov %s787_s7 }
  0xba   : > { %p14_p4 = scmp.ge.s32.totalorder %s17_s11, 4   ;;  %s1135_s7 = smov %s791_s8 }
  0xbb   : > { %s1136_s8 = smov %s885_s19  ;;  %s1137_s9 = smov %s799_s10 }
  0xbc   : > { %s1138_s10 = smov %s1140_s14  ;;  %16 = sbr.rel (!%p14_p4) target bundleno = 6 (0x6), region = 83 }
  0xc1   :  { %581 = vsyncpa [#allocation3], 1 }
  0xc2   :  { %583 = vsyncpa [#allocation3 + $0x1], 1 }
  0xc3   :  { %584 = vsyncpa [#allocation4], 1 }
  0xc4   :  { %586 = vsyncpa [#allocation4 + $0x1], 1 }

</bundles_post_ra>
